<compile_context>
chip_gen: v6e
topology: v6e:2x2x1
jax: 0.10.0
libtpu: 0.0.40
codegen_flags: <defaults>
</compile_context>

<pallas_src>
import functools
import math

import jax
import jax.numpy as jnp
from jax import lax
from jax.experimental import pallas as pl
from jax.experimental.pallas import tpu as pltpu


def _round_up(x, m):
    return ((x + m - 1) // m) * m


def _lcm(a, b):
    return a * b // math.gcd(a, b)


def _choose_rows_per_step(S, R, bytes_per_row, target_bytes):
    """Rows per grid step: multiple of 8 and either a multiple or divisor of S."""
    want = max(8, int(target_bytes // max(1, bytes_per_row)))
    unit = _lcm(S, 8)
    if want >= unit:
        tr = unit * max(1, want // unit)
        tr = min(tr, _round_up(R, unit))          # never bigger than needed
    elif S % 8 == 0:
        # Largest divisor of S that is a multiple of 8 and <= want.
        tr = 8
        for d in range(8, S + 1, 8):
            if S % d == 0 and d <= want:
                tr = d
    else:
        tr = unit                                  # forced; VMEM limit covers it
    return tr


def _pos_layout(S, tr):
    """How the (S, Hp) positional-encoding array maps onto a (tr, Hp) row tile.

    Returns (bt, pos_rows, pos_idx) where bt is the in-kernel tile factor,
    pos_rows the pos block height and pos_idx(global_step) the row-block index.
    """
    if tr % S == 0:
        return tr // S, S, (lambda g: 0)
    assert S % tr == 0, (S, tr)
    npb = S // tr
    return 1, tr, (lambda g: g % npb)


# ---------------------------------------------------------------------------
# Small-table fast path: VMEM-resident table, one-hot MXU gather.
# ---------------------------------------------------------------------------
def _onehot_embed_kernel(ids_ref, emb_ref, pos_ref, out_ref, *, bt):
    """ids_ref: (tr,1) i32 | emb_ref: (Vp,Hp) | pos_ref: (S|tr,Hp) f32 | out: (tr,Hp)."""
    ids = ids_ref[...]                                    # (tr, 1)
    tr = out_ref.shape[0]
    vp = emb_ref.shape[0]
    onehot = (lax.broadcasted_iota(jnp.int32, (tr, vp), 1) == ids).astype(jnp.float32)
    gathered = jnp.dot(onehot, emb_ref[...].astype(jnp.float32),
                       precision=jax.lax.Precision.HIGHEST,
                       preferred_element_type=jnp.float32)
    pos = pos_ref[...]
    if bt > 1:                                            # static branch
        pos = jnp.tile(pos, (bt, 1))
    out_ref[...] = (gathered + pos).astype(out_ref.dtype)


def _forward_small_table(ids_flat, emb_p, pos_p, S, R, Hp, out_dtype,
                         target_step_bytes):
    V = emb_p.shape[0]
    Vp = _round_up(V, 128)                                # lane-dense one-hot dim
    if Vp != V:
        emb_p = jnp.pad(emb_p, ((0, Vp - V), (0, 0)))
    in_esize = jnp.dtype(emb_p.dtype).itemsize
    out_esize = jnp.dtype(out_dtype).itemsize

    # Per-row working set: one-hot row + f32 accumulate + output row.
    bytes_per_row = Vp * 4 + Hp * (4 + out_esize)
    tr = _choose_rows_per_step(S, R, bytes_per_row, target_step_bytes)
    Rp = _round_up(R, tr)
    grid = Rp // tr

    ids = ids_flat
    if Rp > R:
        ids = jnp.pad(ids, (0, Rp - R))                   # pad rows -> token 0
    ids2d = ids.reshape(Rp, 1)

    bt, pos_rows, pos_idx = _pos_layout(S, tr)

    est = (2 * Vp * Hp * in_esize + 2 * tr * Hp * out_esize + 2 * tr * 4
           + 2 * pos_rows * Hp * 4 + tr * Vp * 4 + 2 * tr * Hp * 4)
    vmem_limit = int(min(100 << 20, max(32 << 20, 2 * est)))

    return pl.pallas_call(
        functools.partial(_onehot_embed_kernel, bt=bt),
        out_shape=jax.ShapeDtypeStruct((Rp, Hp), out_dtype),
        grid_spec=pltpu.PrefetchScalarGridSpec(
            num_scalar_prefetch=0,
            grid=(grid,),
            in_specs=[
                pl.BlockSpec((tr, 1), lambda t: (t, 0)),            # token ids
                pl.BlockSpec((Vp, Hp), lambda t: (0, 0)),           # table (VMEM)
                pl.BlockSpec((pos_rows, Hp), lambda t: (pos_idx(t), 0)),
            ],
            out_specs=pl.BlockSpec((tr, Hp), lambda t: (t, 0)),
        ),
        compiler_params=pltpu.CompilerParams(
            dimension_semantics=("parallel",),
            vmem_limit_bytes=vmem_limit,
        ),
    )(ids2d, emb_p, pos_p)


# ---------------------------------------------------------------------------
# Large-table path: HBM-resident table, pipelined per-row DMA gather.
# ---------------------------------------------------------------------------
def _dma_gather_embed_kernel(ids_ref, emb_hbm, pos_ref, out_ref, gbuf, sem, *,
                             tr, bt, steps_per_chunk):
    """ids_ref: (Rp,) i32 SMEM | emb_hbm: (V,Hp) HBM | pos_ref: (S|tr,Hp) f32 VMEM
    out_ref: (tr,Hp) VMEM | gbuf: (2,tr,Hp) VMEM | sem: (2,) DMA (one per slot)."""
    c = pl.program_id(0)                 # independent chunk ("parallel")
    s = pl.program_id(1)                 # step within chunk ("arbitrary")
    slot = s % 2

    def issue(step, slot_idx):
        base = step * tr

        def body(r, carry):
            idx = ids_ref[base + r]
            pltpu.make_async_copy(
                emb_hbm.at[pl.ds(idx, 1), :],
                gbuf.at[slot_idx, pl.ds(r, 1), :],
                sem.at[slot_idx],                         # all rows -> one sem
            ).start()
            return carry

        lax.fori_loop(0, tr, body, 0, unroll=8)

    # Prime this chunk's pipeline on its first step.
    @pl.when(s == 0)
    def _():
        issue(c * steps_per_chunk, 0)

    # Prefetch next step's rows into the other slot BEFORE waiting (ids are
    # already in SMEM); overlaps the next gather with this step's compute/store.
    @pl.when(s + 1 < steps_per_chunk)
    def _():
        issue(c * steps_per_chunk + s + 1, 1 - slot)

    # Single aggregate wait: tr row copies of Hp*esize bytes each == one
    # descriptor shaped like the whole (tr, Hp) slot.
    pltpu.make_async_copy(gbuf.at[slot], gbuf.at[slot], sem.at[slot]).wait()

    pos = pos_ref[...]
    if bt > 1:                                            # static branch
        pos = jnp.tile(pos, (bt, 1))
    out_ref[...] = (gbuf[slot].astype(jnp.float32) + pos).astype(out_ref.dtype)


def _forward_dma_gather(ids_flat, emb_p, pos_p, S, R, Hp, out_dtype,
                        target_step_bytes):
    in_dtype = emb_p.dtype
    in_esize = jnp.dtype(in_dtype).itemsize
    out_esize = jnp.dtype(out_dtype).itemsize

    # HBM bytes moved per row (gather read + output write).
    bytes_per_row = Hp * (in_esize + out_esize)
    tr = _choose_rows_per_step(S, R, bytes_per_row, target_step_bytes)

    total_steps = pl.cdiv(R, tr)
    n_chunks = 2 if total_steps >= 4 else 1               # megacore sharding (v7x)
    spc = pl.cdiv(total_steps, n_chunks)                  # steps per chunk
    Rp = n_chunks * spc * tr

    ids = ids_flat
    if Rp > R:
        ids = jnp.pad(ids, (0, Rp - R))                   # pad rows gather row 0

    bt, pos_rows, pos_idx = _pos_layout(S, tr)

    vmem_use = (2 * tr * Hp * in_esize                    # double-buffered gather
                + 2 * tr * Hp * out_esize                 # double-buffered output
                + 2 * pos_rows * Hp * 4)
    vmem_limit = int(min(100 << 20, max(32 << 20, 2 * vmem_use)))

    return pl.pallas_call(
        functools.partial(_dma_gather_embed_kernel, tr=tr, bt=bt,
                          steps_per_chunk=spc),
        out_shape=jax.ShapeDtypeStruct((Rp, Hp), out_dtype),
        grid_spec=pltpu.PrefetchScalarGridSpec(
            num_scalar_prefetch=1,                        # flattened ids -> SMEM
            grid=(n_chunks, spc),
            in_specs=[
                pl.BlockSpec(memory_space=pl.ANY),        # table stays in HBM
                pl.BlockSpec((pos_rows, Hp),
                             lambda c, s, _ids: (pos_idx(c * spc + s), 0)),
            ],
            out_specs=pl.BlockSpec((tr, Hp),
                                   lambda c, s, _ids: (c * spc + s, 0)),
            scratch_shapes=[
                pltpu.VMEM((2, tr, Hp), in_dtype),        # double-buffered gather
                pltpu.SemaphoreType.DMA((2,)),            # one aggregate sem / slot
            ],
        ),
        compiler_params=pltpu.CompilerParams(
            dimension_semantics=("parallel", "arbitrary"),
            vmem_limit_bytes=vmem_limit,
        ),
    )(ids, emb_p, pos_p)


# ---------------------------------------------------------------------------
# Public entry point.
# ---------------------------------------------------------------------------
def embedder_forward(token_ids, emb_table, pos_enc, *,
                     small_table_bytes=4 * 1024 * 1024,
                     target_step_bytes=4 * 1024 * 1024):
    """Pallas equivalent of Embedder.forward.

    token_ids: (B, S) integer token ids
    emb_table: (V, H) embedding table (token_embedder.weight)
    pos_enc  : (S, H) additive positional encodings
    returns  : (B, S, H) in the embedding-table dtype
    """
    B, S = token_ids.shape
    V, H = emb_table.shape
    assert pos_enc.shape == (S, H)

    out_dtype = emb_table.dtype                           # activations follow table dtype
    in_esize = jnp.dtype(emb_table.dtype).itemsize

    Hp = _round_up(H, 128)                                # lane-dense hidden dim
    R = B * S

    emb_p = emb_table if Hp == H else jnp.pad(emb_table, ((0, 0), (0, Hp - H)))
    pos_p = pos_enc.astype(jnp.float32)
    if Hp != H:
        pos_p = jnp.pad(pos_p, ((0, 0), (0, Hp - H)))

    ids_flat = token_ids.reshape(-1).astype(jnp.int32)
    # TODO(synk): for very large B*S (>~100-200K tokens) feed the ids per-step
    # via an SMEM BlockSpec instead of one whole-array scalar prefetch.

    small_table = (V <= 1024) and (V * Hp * in_esize <= small_table_bytes)
    if small_table:
        out2d = _forward_small_table(ids_flat, emb_p, pos_p, S, R, Hp,
                                     out_dtype, target_step_bytes)
    else:
        out2d = _forward_dma_gather(ids_flat, emb_p, pos_p, S, R, Hp,
                                    out_dtype, target_step_bytes)

    return out2d[:R, :H].reshape(B, S, H)


def make_sinusoidal_pos_enc(seq_len, hidden_dim, dtype=jnp.float32):
    """Canonical sinusoidal positional encodings, interleaved sin/cos, (S, H)."""
    pos = jnp.arange(seq_len, dtype=jnp.float32)[:, None]
    i = jnp.arange(0, hidden_dim, 2, dtype=jnp.float32)[None, :]
    inv_freq = jnp.exp(-(i / hidden_dim) * jnp.log(10000.0))
    angles = pos * inv_freq
    pe = jnp.zeros((seq_len, hidden_dim), dtype=jnp.float32)
    pe = pe.at[:, 0::2].set(jnp.sin(angles))
    pe = pe.at[:, 1::2].set(jnp.cos(angles[:, : hidden_dim // 2]))
    return pe.astype(dtype)


if __name__ == "__main__":
    # Small, module-consistent shapes.
    B, S = 2, 8            # batch, sequence length
    V, H = 64, 32          # vocab_size, hidden_dim (model_cfg)

    key = jax.random.PRNGKey(0)
    k_ids, k_emb = jax.random.split(key)
    token_ids = jax.random.randint(k_ids, (B, S), 0, V, dtype=jnp.int32)
    emb_table = jax.random.normal(k_emb, (V, H), dtype=jnp.float32)
    pos_enc = make_sinusoidal_pos_enc(S, H)
    ref = jnp.take(emb_table, token_ids, axis=0) + pos_enc[None, :, :]

    # 1) Small-table fast path (VMEM-resident table, one-hot MXU gather).
    out = jax.block_until_ready(embedder_forward(token_ids, emb_table, pos_enc))
    assert out.shape == (B, S, H)
    assert jnp.allclose(out, ref, atol=1e-5, rtol=1e-5)

    # 2) Large-table path (HBM table + pipelined per-row DMA gather), forced.
    out_dma = jax.block_until_ready(
        embedder_forward(token_ids, emb_table, pos_enc, small_table_bytes=0))
    assert jnp.allclose(out_dma, ref, atol=1e-5, rtol=1e-5)

    # 3) Multi-step pipelined gather (2 chunks x 2 steps, tr multiple of S).
    B2, S2, V2, H2 = 4, 16, 512, 64
    k_i2, k_e2 = jax.random.split(jax.random.PRNGKey(1))
    ids2 = jax.random.randint(k_i2, (B2, S2), 0, V2, dtype=jnp.int32)
    emb2 = jax.random.normal(k_e2, (V2, H2), dtype=jnp.float32)
    pos2 = make_sinusoidal_pos_enc(S2, H2)
    ref2 = jnp.take(emb2, ids2, axis=0) + pos2[None, :, :]
    out2 = jax.block_until_ready(
        embedder_forward(ids2, emb2, pos2, small_table_bytes=0,
                         target_step_bytes=16 * 1024))
    assert jnp.allclose(out2, ref2, atol=1e-5, rtol=1e-5)

    # 4) Long-sequence case where tr is a divisor of S (pos block cycling).
    B3, S3, V3, H3 = 2, 32, 128, 64
    k_i3, k_e3 = jax.random.split(jax.random.PRNGKey(2))
    ids3 = jax.random.randint(k_i3, (B3, S3), 0, V3, dtype=jnp.int32)
    emb3 = jax.random.normal(k_e3, (V3, H3), dtype=jnp.float32)
    pos3 = make_sinusoidal_pos_enc(S3, H3)
    ref3 = jnp.take(emb3, ids3, axis=0) + pos3[None, :, :]
    out3 = jax.block_until_ready(
        embedder_forward(ids3, emb3, pos3, small_table_bytes=0,
                         target_step_bytes=16 * 1024))
    assert jnp.allclose(out3, ref3, atol=1e-5, rtol=1e-5)

    print("KERNEL_OK")
</pallas_src>

<mosaic_0001>
module attributes {stable_mosaic.version = 11 : i64} {
  func.func @_onehot_embed_kernel(%arg0: i32, %arg1: memref<16x1xi32, #tpu.memory_space<vmem>>, %arg2: memref<128x128xf32, #tpu.memory_space<vmem>>, %arg3: memref<8x128xf32, #tpu.memory_space<vmem>>, %arg4: memref<16x128xf32, #tpu.memory_space<vmem>>) attributes {dimension_semantics = [#tpu.dimension_semantics<parallel>], iteration_bounds = array<i64: 1>, scalar_prefetch = 0 : i64, scratch_operands = 0 : i64, tpu.core_type = #tpu.core_type<tc>, window_params = [{transform_indices = @transform_0, window_bounds = array<i64: 16, 1>}, {pipeline_mode = #tpu.pipeline_mode<synchronous>, transform_indices = @transform_1, window_bounds = array<i64: 128, 128>}, {pipeline_mode = #tpu.pipeline_mode<synchronous>, transform_indices = @transform_2, window_bounds = array<i64: 8, 128>}, {transform_indices = @transform_3, window_bounds = array<i64: 16, 128>}]} {
    %c0 = arith.constant 0 : index
    %c0_0 = arith.constant 0 : index
    %0 = vector.load %arg1[%c0, %c0_0] : memref<16x1xi32, #tpu.memory_space<vmem>>, vector<16x1xi32>
    %1 = tpu.iota {dimensions = array<i32: 1>} : vector<16x128xi32>
    %2 = vector.broadcast %0 : vector<16x1xi32> to vector<16x128xi32>
    %3 = arith.cmpi eq, %1, %2 : vector<16x128xi32>
    %4 = arith.extui %3 : vector<16x128xi1> to vector<16x128xi32>
    %5 = arith.sitofp %4 : vector<16x128xi32> to vector<16x128xf32>
    %c0_1 = arith.constant 0 : index
    %c0_2 = arith.constant 0 : index
    %6 = vector.load %arg2[%c0_1, %c0_2] : memref<128x128xf32, #tpu.memory_space<vmem>>, vector<128x128xf32>
    %cst = arith.constant dense<0.000000e+00> : vector<16x128xf32>
    %7 = tpu.matmul %5, %6, %cst {dimension_numbers = #tpu.dot_dimension_numbers<[1], [0], [0], [1], [0, 0, 1, 1], [], []>, precision = #tpu.contract_precision<fp32>} : vector<16x128xf32>, vector<128x128xf32>, vector<16x128xf32> -> vector<16x128xf32>
    %c0_3 = arith.constant 0 : index
    %c0_4 = arith.constant 0 : index
    %8 = vector.load %arg3[%c0_3, %c0_4] : memref<8x128xf32, #tpu.memory_space<vmem>>, vector<8x128xf32>
    %9 = tpu.concatenate %8, %8 in 0 : vector<8x128xf32>, vector<8x128xf32> -> vector<16x128xf32>
    %10 = arith.addf %7, %9 : vector<16x128xf32>
    %c0_5 = arith.constant 0 : index
    %c0_6 = arith.constant 0 : index
    %11 = vector.load %arg4[%c0_5, %c0_6] : memref<16x128xf32, #tpu.memory_space<vmem>>, vector<16x128xf32>
    tpu.vector_store %arg4[%c0_5, %c0_6], %10 {strides = array<i32>} : memref<16x128xf32, #tpu.memory_space<vmem>>, vector<16x128xf32>,
    return
  }
  func.func @transform_0(%arg0: i32) -> (i32, i32) {
    %c0_i32 = arith.constant 0 : i32
    %c0_i32_0 = arith.constant 0 : i32
    return %arg0, %c0_i32 : i32, i32
  }
  func.func @transform_1(%arg0: i32) -> (i32, i32) {
    %c0_i32 = arith.constant 0 : i32
    %c0_i32_0 = arith.constant 0 : i32
    %c0_i32_1 = arith.constant 0 : i32
    return %c0_i32, %c0_i32_0 : i32, i32
  }
  func.func @transform_2(%arg0: i32) -> (i32, i32) {
    %c0_i32 = arith.constant 0 : i32
    %c0_i32_0 = arith.constant 0 : i32
    %c0_i32_1 = arith.constant 0 : i32
    return %c0_i32, %c0_i32_0 : i32, i32
  }
  func.func @transform_3(%arg0: i32) -> (i32, i32) {
    %c0_i32 = arith.constant 0 : i32
    %c0_i32_0 = arith.constant 0 : i32
    return %arg0, %c0_i32 : i32, i32
  }
}

</mosaic_0001>

<bundles_post_ra>
// kernel: tpu_custom_call.1
= control target key start
LH: loop header
LB: loop body
LE: loop exit
PB: predicated region body
PF: predicated region fallthrough
CT: control target
= control target key end

     0   :  { %8 = vsyncpa [#allocation3], 0  ;;  %s1556_s0 = inlined_call_operand.vmem [shape: s32[16,1], index: 0, kind: input, shape index: {}]   ;;  %s1557_s1 = inlined_call_operand.hbm [shape: f32[128,128], index: 1, kind: input, shape index: {}]   ;;  %s1558_s2 = inlined_call_operand.vmem [shape: f32[8,128], index: 2, kind: input, shape index: {}]   ;;  %s1559_s3 = inlined_call_operand.hbm [shape: f32[16,128], index: 3, kind: output, shape index: {}]  }
   0x1   :  { %9 = vsyncpa [#allocation4], 0  ;;  %s1143_s12 = smov [#allocation2]  }
   0x2   :  { %s17_s13 = sshll.u32 %s1143_s12, 4  ;;  %s18_s13 = int_to_ptr.vmem [resolvable:$true] %s17_s13 }
   0x3   :  { %s1107_s14 = scalar_lea.vmem %s18_s13, 2048  ;;  %p1112_p1 = scmp.lt.s32.totalorder %s18_s13, %s18_s13 }
   0x4   :  { %p1108_p0 = scmp.ne.s32.totalorder %s18_s13, %s1107_s14  ;;  %p1113_p2 = scmp.lt.s32.totalorder %s1107_s14, %s1107_s14 }
   0x6   :  { %p1114_p3 = por %p1113_p2, %p1112_p1 }
   0x8   :  { %p1115_p4 = pnand %p1114_p3, %p1108_p0 }
   0xa   :  { %1118 = shalt.err (!%p1115_p4)
}
   0xb   :  { %s1144_s15 = smov 128   ;;  %s1145_s16 = smov 8  }
   0xc   :  { %23 = dma.hbm_to_vmem [thread:$0]  %s1557_s1, 2048, %s18_s13, [#allocation3], %s1144_s15, %s1144_s15, %s1145_s16  }
   0xd   :  { %1139 = dma.done.wait [#allocation3], 2048  }
   0xe   :  { %1140 = vsyncadd [#allocation3], 4294965248  ;;  %v1146_v0 = vmov 0   ;;  %v29_v1 = vld [vmem:[%s1556_s0] sm:$0xff]  ;;  %v30_v2 = vld [vmem:[%s1556_s0 + $0x8] sm:$0xff] }
   0xf   :  { %1098 = vset.pattern.permute.xlu0 %v1146_v0  ;;  %v60_v3 = vld [vmem:[#allocation2 + $0x78] sm:$0xff]  ;;  %v59_v5 = vld [vmem:[#allocation2 + $0x70] sm:$0xff]  ;;  %v58_v6 = vld [vmem:[#allocation2 + $0x68] sm:$0xff] }
  0x10   :  { %34 = vperm.xlu0 %1098, %v29_v1   ;;  %v1182_v4 = vand.u32 4294901760, %v60_v3  ;;  %v57_v7 = vld [vmem:[#allocation2 + $0x60] sm:$0xff]  ;;  %v1184_v8 = vand.u32 4294901760, %v59_v5  ;;  %v1186_v9 = vand.u32 4294901760, %v58_v6  ;;  %v56_v11 = vld [vmem:[#allocation2 + $0x58] sm:$0xff]  ;;  %v55_v12 = vld [vmem:[#allocation2 + $0x50] sm:$0xff] }
  0x11   :  { %v1188_v10 = vand.u32 4294901760, %v57_v7  ;;  %v54_v13 = vld [vmem:[#allocation2 + $0x48] sm:$0xff]  ;;  %v1193_v15 = vand.u32 4294901760, %v56_v11  ;;  %v1196_v16 = vand.u32 4294901760, %v55_v12  ;;  %v53_v18 = vld [vmem:[#allocation2 + $0x40] sm:$0xff]  ;;  %v52_v35 = vld [vmem:[#allocation2 + $0x38] sm:$0xff] }
  0x12   :  { %v1191_v14 = vsub.f32 %v60_v3, %v1182_v4  ;;  %881 = vmatprep.subr.mxu0 %v1182_v4  ;;  %v1198_v17 = vand.u32 4294901760, %v54_v13  ;;  %v1201_v19 = vsub.f32 %v59_v5, %v1184_v8  ;;  %v1204_v20 = vsub.f32 %v58_v6, %v1186_v9  ;;  %v51_v39 = vld [vmem:[#allocation2 + $0x30] sm:$0xff]  ;;  %v50_v40 = vld [vmem:[#allocation2 + $0x28] sm:$0xff]  ;;  %v49_v43 = vld [vmem:[#allocation2 + $0x20] sm:$0xff] }
  0x13   :  { %v1207_v21 = vsub.f32 %v57_v7, %v1188_v10  ;;  %882 = vmatpush3.msra.mxu0 %v1182_v4  ;;  %v1210_v22 = vand.u32 4294901760, %v53_v18  ;;  %v1216_v24 = vsub.f32 %v56_v11, %v1193_v15  ;;  %v1219_v25 = vsub.f32 %v55_v12, %v1196_v16  ;;  %v48_v50 = vld [vmem:[#allocation2 + $0x18] sm:$0xff]  ;;  %v47_v57 = vld [vmem:[#allocation2 + $0x10] sm:$0xff]  ;;  %v46_v63 = vld [vmem:[#allocation2 + $0x8] sm:$0xff] }
  0x14   :  { %37 = vperm.xlu0 %1098, %v30_v2   ;;  %v1213_v23 = vand.u32 4294901760, %v1191_v14  ;;  %883 = vmatprep.subr.mxu0 %v1184_v8  ;;  %v1223_v26 = vand.u32 4294901760, %v1201_v19  ;;  %v1226_v27 = vand.u32 4294901760, %v1204_v20  ;;  %v1233_v29 = vsub.f32 %v54_v13, %v1198_v17  ;;  %v45_v6 = vld [vmem:[#allocation2] sm:$0xff] }
  0x15   :  { %v1229_v28 = vand.u32 4294901760, %v1207_v21  ;;  %884 = vmatpush3.msra.mxu0 %v1184_v8  ;;  %v1238_v31 = vand.u32 4294901760, %v1216_v24  ;;  %v1247_v34 = vsub.f32 %v53_v18, %v1210_v22  ;;  %v1252_v38 = vand.u32 4294901760, %v1219_v25 }
  0x16   :  { %v167_v30 = vsub.f32 %v1191_v14, %v1213_v23  ;;  %885 = vmatprep.subr.mxu0 %v1186_v9  ;;  %v174_v32 = vsub.f32 %v1201_v19, %v1223_v26  ;;  %v181_v33 = vsub.f32 %v1204_v20, %v1226_v27  ;;  %v1256_v42 = vand.u32 4294901760, %v1233_v29 }
  0x17   :  { %886 = vmatpush3.msra.mxu0 %v1186_v9  ;;  %v188_v37 = vsub.f32 %v1207_v21, %v1229_v28  ;;  %v195_v45 = vsub.f32 %v1216_v24, %v1238_v31  ;;  %v1261_v46 = vand.u32 4294901760, %v52_v35  ;;  %v1265_v47 = vand.u32 4294901760, %v1247_v34 }
  0x18   :  { %v168_v36 = vand.u32 4294901760, %v167_v30  ;;  %887 = vmatprep.subr.mxu0 %v1188_v10  ;;  %v175_v41 = vand.u32 4294901760, %v174_v32  ;;  %v182_v44 = vand.u32 4294901760, %v181_v33  ;;  %v1268_v48 = vand.u32 4294901760, %v51_v39 }
  0x19   :  { %888 = vmatpush3.msra.mxu0 %v1188_v10  ;;  %v1270_v49 = vand.u32 4294901760, %v50_v40  ;;  %v189_v51 = vand.u32 4294901760, %v188_v37  ;;  %v202_v52 = vsub.f32 %v1219_v25, %v1252_v38  ;;  %v1275_v53 = vsub.f32 %v52_v35, %v1261_v46 }
  0x1a   :  { %916 = vmatprep.subr.mxu1 %v168_v36  ;;  %889 = vmatprep.subr.mxu0 %v1193_v15  ;;  %v1278_v54 = vand.u32 4294901760, %v49_v43  ;;  %v209_v55 = vsub.f32 %v1233_v29, %v1256_v42  ;;  %v1283_v56 = vsub.f32 %v51_v39, %v1268_v48  ;;  %v196_v58 = vand.u32 4294901760, %v195_v45 }
  0x1b   :  { %917 = vmatpush3.msra.mxu1 %v168_v36  ;;  %890 = vmatpush3.msra.mxu0 %v1193_v15  ;;  %v1287_v59 = vand.u32 4294901760, %v1275_v53  ;;  %v1290_v60 = vsub.f32 %v50_v40, %v1270_v49  ;;  %v1293_v61 = vand.u32 4294901760, %v48_v50  ;;  %v216_v62 = vsub.f32 %v1247_v34, %v1265_v47 }
  0x1c   :  { %918 = vmatprep.subr.mxu1 %v175_v41  ;;  %891 = vmatprep.subr.mxu0 %v1196_v16  ;;  %v203_v0 = vand.u32 4294901760, %v202_v52  ;;  %v1299_v1 = vand.u32 4294901760, %v1283_v56  ;;  %v1302_v2 = vsub.f32 %v49_v43, %v1278_v54  ;;  %v1305_v3 = vand.u32 4294901760, %v47_v57 }
  0x1d   :  { %919 = vmatpush3.msra.mxu1 %v175_v41  ;;  %892 = vmatpush3.msra.mxu0 %v1196_v16  ;;  %v210_v5 = vand.u32 4294901760, %v209_v55  ;;  %v223_v7 = vsub.f32 %v1275_v53, %v1287_v59  ;;  %v1311_v11 = vand.u32 4294901760, %v1290_v60  ;;  %v1314_v12 = vsub.f32 %v48_v50, %v1293_v61 }
  0x1e   :  { %920 = vmatprep.subr.mxu1 %v182_v44  ;;  %893 = vmatprep.subr.mxu0 %v1198_v17  ;;  %v1317_v13 = vand.u32 4294901760, %v46_v63  ;;  %v217_v18 = vand.u32 4294901760, %v216_v62  ;;  %v230_v30 = vsub.f32 %v1283_v56, %v1299_v1  ;;  %v1323_v32 = vand.u32 4294901760, %v1302_v2 }
  0x1f   :  { %921 = vmatpush3.msra.mxu1 %v182_v44  ;;  %894 = vmatpush3.msra.mxu0 %v1198_v17  ;;  %v1326_v33 = vsub.f32 %v47_v57, %v1305_v3  ;;  %v1329_v35 = vand.u32 4294901760, %v45_v6  ;;  %v224_v36 = vand.u32 4294901760, %v223_v7  ;;  %v237_v37 = vsub.f32 %v1290_v60, %v1311_v11 }
  0x20   :  { %922 = vmatprep.subr.mxu1 %v189_v51  ;;  %895 = vmatprep.subr.mxu0 %v1210_v22  ;;  %v1335_v39 = vand.u32 4294901760, %v1314_v12  ;;  %v1338_v40 = vsub.f32 %v46_v63, %v1317_v13  ;;  %v231_v41 = vand.u32 4294901760, %v230_v30  ;;  %v244_v43 = vsub.f32 %v1302_v2, %v1323_v32 }
  0x21   :  { %923 = vmatpush3.msra.mxu1 %v189_v51  ;;  %896 = vmatpush3.msra.mxu0 %v1210_v22  ;;  %v1345_v44 = vand.u32 4294901760, %v1326_v33  ;;  %v1348_v45 = vsub.f32 %v45_v6, %v1329_v35  ;;  %v238_v50 = vand.u32 4294901760, %v237_v37  ;;  %v1147_v37 = vmov 0.0  }
  0x22   :  { %924 = vmatprep.subr.mxu1 %v196_v58  ;;  %897 = vmatprep.subr.mxu0 %v1261_v46  ;;  %v251_v51 = vsub.f32 %v1314_v12, %v1335_v39  ;;  %v1355_v52 = vand.u32 4294901760, %v1338_v40  ;;  %v245_v55 = vand.u32 4294901760, %v244_v43  ;;  %v1148_v43 = vmov 1.0  }
  0x23   :  { %925 = vmatpush3.msra.mxu1 %v196_v58  ;;  %898 = vmatpush3.msra.mxu0 %v1261_v46  ;;  %v258_v57 = vsub.f32 %v1326_v33, %v1345_v44  ;;  %v1362_v58 = vand.u32 4294901760, %v1348_v45 }
  0x24   :  { %926 = vmatprep.subr.mxu1 %v203_v0  ;;  %899 = vmatprep.subr.mxu0 %v1268_v48  ;;  %v252_v62 = vand.u32 4294901760, %v251_v51  ;;  %v265_v63 = vsub.f32 %v1338_v40, %v1355_v52 }
  0x25   :  { %927 = vmatpush3.msra.mxu1 %v203_v0  ;;  %900 = vmatpush3.msra.mxu0 %v1268_v48  ;;  %v259_v0 = vand.u32 4294901760, %v258_v57 }
  0x26   :  { %928 = vmatprep.subr.mxu1 %v210_v5  ;;  %901 = vmatprep.subr.mxu0 %v1270_v49  ;;  %v266_v6 = vand.u32 4294901760, %v265_v63 }
  0x27   :  { %929 = vmatpush3.msra.mxu1 %v210_v5  ;;  %902 = vmatpush3.msra.mxu0 %v1270_v49  ;;  %v272_v5 = vsub.f32 %v1348_v45, %v1362_v58 }
  0x28   :  { %930 = vmatprep.subr.mxu1 %v217_v18  ;;  %903 = vmatprep.subr.mxu0 %v1278_v54 }
  0x29   :  { %931 = vmatpush3.msra.mxu1 %v217_v18  ;;  %904 = vmatpush3.msra.mxu0 %v1278_v54  ;;  %v273_v7 = vand.u32 4294901760, %v272_v5  ;;  %v31_v18 = vlaneseq }
  0x2a   :  { %932 = vmatprep.subr.mxu1 %v224_v36  ;;  %905 = vmatprep.subr.mxu0 %v1293_v61 }
  0x2b   :  { %933 = vmatpush3.msra.mxu1 %v224_v36  ;;  %906 = vmatpush3.msra.mxu0 %v1293_v61  ;;  %v1376_v30 = vand.u32 127, %v31_v18 }
  0x2c   :  { %934 = vmatprep.subr.mxu1 %v231_v41  ;;  %907 = vmatprep.subr.mxu0 %v1305_v3 }
  0x2d   :  { %935 = vmatpush3.msra.mxu1 %v231_v41  ;;  %908 = vmatpush3.msra.mxu0 %v1305_v3 }
  0x2e   :  { %936 = vmatprep.subr.mxu1 %v238_v50  ;;  %909 = vmatprep.subr.mxu0 %v1317_v13 }
  0x2f   :  { %937 = vmatpush3.msra.mxu1 %v238_v50  ;;  %910 = vmatpush3.msra.mxu0 %v1317_v13 }
  0x30   :  { %938 = vmatprep.subr.mxu1 %v245_v55  ;;  %911 = vmatprep.subr.mxu0 %v1329_v35 }
  0x31   :  { %939 = vmatpush3.msra.mxu1 %v245_v55  ;;  %912 = vmatpush3.msra.mxu0 %v1329_v35 }
  0x32   :  { %940 = vmatprep.subr.mxu1 %v252_v62  ;;  %951 = vmatprep.subr.mxu0 %v1191_v14 }
  0x33   :  { %941 = vmatpush3.msra.mxu1 %v252_v62 }
  0x34   :  { %942 = vmatprep.subr.mxu1 %v259_v0 }
  0x35   :  { %943 = vmatpush3.msra.mxu1 %v259_v0 }
  0x36   :  { %944 = vmatprep.subr.mxu1 %v266_v6 }
  0x37   :  { %945 = vmatpush3.msra.mxu1 %v266_v6 }
  0x38   :  { %946 = vmatprep.subr.mxu1 %v273_v7 }
  0x39   :  { %947 = vmatpush3.msra.mxu1 %v273_v7 }
  0x3a   :  { %986 = vmatprep.subr.mxu1 %v1182_v4 }
  0x8b   :  { %v1378_v36 = vpop.permute.xlu0 %34 }
  0x8c   :  { %vm39_vm0 = vcmp.eq.s32.totalorder %v1376_v30, %v1378_v36 }
  0x8d   :  { %v765_v41 = vsel %vm39_vm0, 1.0, %v1147_v37  ;;  %948 = vmatprep.mubr.msk.f32.mxu1 %vm39_vm0, %v1148_v43 }
  0x8e   :  { %v144_v50 = vsub.f32 %v765_v41, %v765_v41 }
  0x8f   :  { %v1389_v51 = vpop.permute.xlu0 %37 }
  0x90   :  { %vm40_vm1 = vcmp.eq.s32.totalorder %v1376_v30, %v1389_v51  ;;  %v145_v55 = vand.u32 4294901760, %v144_v50 }
  0x91   :  { %v766_v57 = vsel %vm40_vm1, 1.0, %v1147_v37  ;;  %949 = vmatmul.mubr.msk.f32.vlgmr.msra.gmra.mxu1 %vm40_vm1, %v1148_v43 }
  0x92   :  { %v1400_v62 = vsub.f32 %v766_v57, %v766_v57  ;;  %987 = vmatpush3.msra.mxu1 %v1182_v4  ;;  %1018 = vmatprep.mubr.f32.mxu1 %v145_v55  ;;  %v146_v63 = vsub.f32 %v144_v50, %v145_v55 }
  0x93   :  { %988 = vmatprep.subr.mxu1 %v1184_v8 }
  0x94   :  { %989 = vmatpush3.msra.mxu1 %v1184_v8  ;;  %v147_v0 = vand.u32 4294901760, %v146_v63  ;;  %v155_v5 = vand.u32 4294901760, %v1400_v62 }
  0x95   :  { %990 = vmatprep.subr.mxu1 %v1186_v9 }
  0x96   :  { %991 = vmatpush3.msra.mxu1 %v1186_v9  ;;  %913 = vmatprep.mubr.f32.mxu0 %v147_v0  ;;  %v156_v6 = vsub.f32 %v1400_v62, %v155_v5 }
  0x97   :  { %992 = vmatprep.subr.mxu1 %v1188_v10 }
  0x98   :  { %993 = vmatpush3.msra.mxu1 %v1188_v10  ;;  %v157_v7 = vand.u32 4294901760, %v156_v6 }
  0x99   :  { %994 = vmatprep.subr.mxu1 %v1193_v15 }
  0x9a   :  { %995 = vmatpush3.msra.mxu1 %v1193_v15  ;;  %914 = vmatmul.mubr.f32.vlgmr.msra.gmra.mxu0 %v157_v7 }
  0x9b   :  { %952 = vmatpush3.msra.mxu0 %v1191_v14  ;;  %996 = vmatprep.subr.mxu1 %v1196_v16 }
  0x9c   :  { %953 = vmatprep.subr.mxu0 %v1201_v19  ;;  %983 = vmatprep.mubr.f32.mxu0 %v144_v50 }
  0x9d   :  { %997 = vmatpush3.msra.mxu1 %v1196_v16  ;;  %954 = vmatpush3.msra.mxu0 %v1201_v19 }
  0x9e   :  { %998 = vmatprep.subr.mxu1 %v1198_v17  ;;  %955 = vmatprep.subr.mxu0 %v1204_v20 }
  0x9f   :  { %999 = vmatpush3.msra.mxu1 %v1198_v17  ;;  %956 = vmatpush3.msra.mxu0 %v1204_v20 }
  0xa0   :  { %1000 = vmatprep.subr.mxu1 %v1210_v22  ;;  %957 = vmatprep.subr.mxu0 %v1207_v21 }
  0xa1   :  { %1001 = vmatpush3.msra.mxu1 %v1210_v22  ;;  %958 = vmatpush3.msra.mxu0 %v1207_v21 }
  0xa2   :  { %1002 = vmatprep.subr.mxu1 %v1261_v46  ;;  %959 = vmatprep.subr.mxu0 %v1216_v24 }
  0xa3   :  { %1003 = vmatpush3.msra.mxu1 %v1261_v46  ;;  %960 = vmatpush3.msra.mxu0 %v1216_v24 }
  0xa4   :  { %1004 = vmatprep.subr.mxu1 %v1268_v48  ;;  %961 = vmatprep.subr.mxu0 %v1219_v25 }
  0xa5   :  { %1005 = vmatpush3.msra.mxu1 %v1268_v48  ;;  %962 = vmatpush3.msra.mxu0 %v1219_v25 }
  0xa6   :  { %1006 = vmatprep.subr.mxu1 %v1270_v49  ;;  %963 = vmatprep.subr.mxu0 %v1233_v29 }
  0xa7   :  { %1007 = vmatpush3.msra.mxu1 %v1270_v49  ;;  %964 = vmatpush3.msra.mxu0 %v1233_v29 }
  0xa8   :  { %1008 = vmatprep.subr.mxu1 %v1278_v54  ;;  %965 = vmatprep.subr.mxu0 %v1247_v34 }
  0xa9   :  { %1009 = vmatpush3.msra.mxu1 %v1278_v54  ;;  %966 = vmatpush3.msra.mxu0 %v1247_v34 }
  0xaa   :  { %1010 = vmatprep.subr.mxu1 %v1293_v61  ;;  %967 = vmatprep.subr.mxu0 %v1275_v53 }
  0xab   :  { %1011 = vmatpush3.msra.mxu1 %v1293_v61  ;;  %968 = vmatpush3.msra.mxu0 %v1275_v53 }
  0xac   :  { %1012 = vmatprep.subr.mxu1 %v1305_v3  ;;  %969 = vmatprep.subr.mxu0 %v1283_v56 }
  0xad   :  { %1013 = vmatpush3.msra.mxu1 %v1305_v3  ;;  %970 = vmatpush3.msra.mxu0 %v1283_v56 }
  0xae   :  { %1014 = vmatprep.subr.mxu1 %v1317_v13  ;;  %971 = vmatprep.subr.mxu0 %v1290_v60 }
  0xaf   :  { %1015 = vmatpush3.msra.mxu1 %v1317_v13  ;;  %972 = vmatpush3.msra.mxu0 %v1290_v60 }
  0xb0   :  { %1016 = vmatprep.subr.mxu1 %v1329_v35  ;;  %973 = vmatprep.subr.mxu0 %v1302_v2 }
  0xb1   :  { %1017 = vmatpush3.msra.mxu1 %v1329_v35  ;;  %974 = vmatpush3.msra.mxu0 %v1302_v2 }
  0xb2   :  { %1019 = vmatmul.mubr.f32.vlgmr.msra.gmra.mxu1 %v155_v5  ;;  %1056 = vmatprep.subr.mxu1 %v1182_v4 }
  0xb3   :  { %975 = vmatprep.subr.mxu0 %v1314_v12  ;;  %1057 = vmatpush3.msra.mxu1 %v1182_v4 }
  0xb4   :  { %1088 = vmatprep.mubr.msk.f32.mxu1 %vm39_vm0, %v1148_v43  ;;  %976 = vmatpush3.msra.mxu0 %v1314_v12 }
  0xb5   :  { %1058 = vmatprep.subr.mxu1 %v1184_v8  ;;  %977 = vmatprep.subr.mxu0 %v1326_v33 }
  0xb6   :  { %1059 = vmatpush3.msra.mxu1 %v1184_v8  ;;  %978 = vmatpush3.msra.mxu0 %v1326_v33  ;;  %v61_v8 = vld [vmem:[%s1558_s2] sm:$0xff]  ;;  %s1149_s2 = smov [#allocation5]  }
  0xb7   :  { %1060 = vmatprep.subr.mxu1 %v1186_v9  ;;  %979 = vmatprep.subr.mxu0 %v1338_v40  ;;  %s753_s23 = sshll.u32 %s1149_s2, 4  ;;  %s754_s23 = int_to_ptr.vmem [resolvable:$true] %s753_s23 }
  0xb8   :  { %1061 = vmatpush3.msra.mxu1 %v1186_v9  ;;  %980 = vmatpush3.msra.mxu0 %v1338_v40  ;;  %s1119_s24 = scalar_lea.vmem %s754_s23, 256  ;;  %p1124_p6 = scmp.lt.s32.totalorder %s754_s23, %s754_s23 }
  0xb9   :  { %1062 = vmatprep.subr.mxu1 %v1188_v10  ;;  %981 = vmatprep.subr.mxu0 %v1348_v45  ;;  %p1120_p5 = scmp.ne.s32.totalorder %s754_s23, %s1119_s24  ;;  %p1125_p7 = scmp.lt.s32.totalorder %s1119_s24, %s1119_s24 }
  0xba   :  { %1063 = vmatpush3.msra.mxu1 %v1188_v10  ;;  %982 = vmatpush3.msra.mxu0 %v1348_v45 }
  0xbb   :  { %1064 = vmatprep.subr.mxu1 %v1193_v15  ;;  %984 = vmatmul.mubr.f32.vlgmr.msra.gmra.mxu0 %v1400_v62  ;;  %p1126_p8 = por %p1125_p7, %p1124_p6 }
  0xbc   :  { %1021 = vmatprep.subr.mxu0 %v1213_v23  ;;  %1065 = vmatpush3.msra.mxu1 %v1193_v15 }
  0xbd   :  { %1022 = vmatpush3.msra.mxu0 %v1213_v23  ;;  %1053 = vmatprep.mubr.msk.f32.mxu0 %vm39_vm0, %v1148_v43  ;;  %p1127_p9 = pnand %p1126_p8, %p1120_p5 }
  0xbe   :  { %1066 = vmatprep.subr.mxu1 %v1196_v16  ;;  %1023 = vmatprep.subr.mxu0 %v1223_v26 }
  0xbf   :  { %1067 = vmatpush3.msra.mxu1 %v1196_v16  ;;  %1024 = vmatpush3.msra.mxu0 %v1223_v26 }
  0xc0   :  { %1068 = vmatprep.subr.mxu1 %v1198_v17  ;;  %1025 = vmatprep.subr.mxu0 %v1226_v27 }
  0xc1   :  { %1069 = vmatpush3.msra.mxu1 %v1198_v17  ;;  %1026 = vmatpush3.msra.mxu0 %v1226_v27 }
  0xc2   :  { %1070 = vmatprep.subr.mxu1 %v1210_v22  ;;  %1027 = vmatprep.subr.mxu0 %v1229_v28 }
  0xc3   :  { %1071 = vmatpush3.msra.mxu1 %v1210_v22  ;;  %1028 = vmatpush3.msra.mxu0 %v1229_v28 }
  0xc4   :  { %1072 = vmatprep.subr.mxu1 %v1261_v46  ;;  %1029 = vmatprep.subr.mxu0 %v1238_v31 }
  0xc5   :  { %1073 = vmatpush3.msra.mxu1 %v1261_v46  ;;  %1030 = vmatpush3.msra.mxu0 %v1238_v31 }
  0xc6   :  { %1074 = vmatprep.subr.mxu1 %v1268_v48  ;;  %1031 = vmatprep.subr.mxu0 %v1252_v38 }
  0xc7   :  { %1075 = vmatpush3.msra.mxu1 %v1268_v48  ;;  %1032 = vmatpush3.msra.mxu0 %v1252_v38 }
  0xc8   :  { %1076 = vmatprep.subr.mxu1 %v1270_v49  ;;  %1033 = vmatprep.subr.mxu0 %v1256_v42 }
  0xc9   :  { %1077 = vmatpush3.msra.mxu1 %v1270_v49  ;;  %1034 = vmatpush3.msra.mxu0 %v1256_v42 }
  0xca   :  { %1078 = vmatprep.subr.mxu1 %v1278_v54  ;;  %1035 = vmatprep.subr.mxu0 %v1265_v47 }
  0xcb   :  { %1079 = vmatpush3.msra.mxu1 %v1278_v54  ;;  %1036 = vmatpush3.msra.mxu0 %v1265_v47 }
  0xcc   :  { %1080 = vmatprep.subr.mxu1 %v1293_v61  ;;  %1037 = vmatprep.subr.mxu0 %v1287_v59 }
  0xcd   :  { %1081 = vmatpush3.msra.mxu1 %v1293_v61  ;;  %1038 = vmatpush3.msra.mxu0 %v1287_v59 }
  0xce   :  { %1082 = vmatprep.subr.mxu1 %v1305_v3  ;;  %1039 = vmatprep.subr.mxu0 %v1299_v1 }
  0xcf   :  { %1083 = vmatpush3.msra.mxu1 %v1305_v3  ;;  %1040 = vmatpush3.msra.mxu0 %v1299_v1 }
  0xd0   :  { %1084 = vmatprep.subr.mxu1 %v1317_v13  ;;  %1041 = vmatprep.subr.mxu0 %v1311_v11 }
  0xd1   :  { %1085 = vmatpush3.msra.mxu1 %v1317_v13  ;;  %1042 = vmatpush3.msra.mxu0 %v1311_v11 }
  0xd2   :  { %1086 = vmatprep.subr.mxu1 %v1329_v35  ;;  %1043 = vmatprep.subr.mxu0 %v1323_v32 }
  0xd3   :  { %1087 = vmatpush3.msra.mxu1 %v1329_v35  ;;  %1044 = vmatpush3.msra.mxu0 %v1323_v32 }
  0xd4   :  { %1089 = vmatmul.mubr.msk.f32.vlgmr.msra.gmra.mxu1 %vm40_vm1, %v1148_v43  ;;  %1045 = vmatprep.subr.mxu0 %v1335_v39 }
  0xd5   :  { %1046 = vmatpush3.msra.mxu0 %v1335_v39 }
  0xd6   :  { %1047 = vmatprep.subr.mxu0 %v1345_v44 }
  0xd7   :  { %1048 = vmatpush3.msra.mxu0 %v1345_v44 }
  0xd8   :  { %1049 = vmatprep.subr.mxu0 %v1355_v52 }
  0xd9   :  { %1050 = vmatpush3.msra.mxu0 %v1355_v52 }
  0xda   :  { %1051 = vmatprep.subr.mxu0 %v1362_v58 }
  0xdb   :  { %1052 = vmatpush3.msra.mxu0 %v1362_v58 }
  0xdc   :  { %1054 = vmatmul.mubr.msk.f32.vlgmr.msra.gmra.mxu0 %vm40_vm1, %v1148_v43 }
 0x151   :  { %v950_v9 = vpop.f32.mrf.mxu1 }
 0x153   :  { %v310_v17 = vpop.f32.mrf.mxu1 }
 0x15a   :  { %v915_v4 = vpop.f32.mrf.mxu0 }
 0x15b   :  { %v160_v14 = vadd.f32 %v915_v4, %v61_v8 }
 0x15c   :  { %v149_v10 = vpop.f32.mrf.mxu0 }
 0x15d   :  { %v150_v16 = vadd.f32 %v149_v10, %v61_v8  ;;  %v317_v19 = vadd.f32 %v950_v9, %v160_v14 }
 0x15f   :  { %v311_v23 = vadd.f32 %v310_v17, %v150_v16 }
 0x172   :  { %v1020_v20 = vpop.f32.mrf.mxu1 }
 0x174   :  { %v516_v25 = vpop.f32.mrf.mxu1 }
 0x17b   :  { %v985_v15 = vpop.f32.mrf.mxu0 }
 0x17c   :  { %v428_v22 = vadd.f32 %v985_v15, %v317_v19 }
 0x17d   :  { %v420_v21 = vpop.f32.mrf.mxu0 }
 0x17e   :  { %v421_v24 = vadd.f32 %v420_v21, %v311_v23  ;;  %v525_v26 = vadd.f32 %v1020_v20, %v428_v22 }
 0x180   :  { %v517_v31 = vadd.f32 %v516_v25, %v421_v24 }
 0x194   :  { %v1090_v27 = vpop.f32.mrf.mxu1 }
 0x196   :  { %v736_v46 = vpop.f32.mrf.mxu1 }
 0x19c   :  { %v1055_v28 = vpop.f32.mrf.mxu0 }
 0x19d   :  { %v650_v29 = vadd.f32 %v1055_v28, %v525_v26 }
 0x19e   :  { %v643_v34 = vpop.f32.mrf.mxu0 }
 0x19f   :  { %v743_v38 = vadd.f32 %v1090_v27, %v650_v29  ;;  %v644_v42 = vadd.f32 %v643_v34, %v517_v31 }
 0x1a1   :  { %747 = vst [vmem:[#allocation5 + $0x8] sm:$0xff] %v743_v38  ;;  %v737_v47 = vadd.f32 %v736_v46, %v644_v42 }
 0x1a3   :  { %746 = vst [vmem:[#allocation5] sm:$0xff] %v737_v47 }
 0x1a4   :  { %1130 = shalt.err (!%p1127_p9)
}
 0x1a5   :  { %759 = dma.vmem_to_hbm [thread:$0]  %s754_s23, 256, %s1559_s3, [#allocation4], %s1144_s15, %s1144_s15, %s1145_s16  }
 0x1a6   :  { %1141 = dma.done.wait [#allocation4], 256  }
 0x1a7   :  { %1142 = vsyncadd [#allocation4], 4294967040 }
 0x1a8   :  { %763 = vsyncpa [#allocation3], 1 }
 0x1a9   :  { %764 = vsyncpa [#allocation4], 1 }

</bundles_post_ra>
